<compile_context>
chip_gen: v7x
topology: tpu7x:2x2x1
jax: 0.10.0
libtpu: 0.0.40
codegen_flags: <defaults>
</compile_context>

<pallas_src>
import functools

import jax
import jax.numpy as jnp
from jax.experimental import pallas as pl
from jax.experimental.pallas import tpu as pltpu


_VMEM_LIMIT = 32 * 1024 * 1024


# ----------------------------------------------------------------------------
# pltpu.roll direction probe (guards the roll sign convention at runtime).
# ----------------------------------------------------------------------------
def _roll_matches_numpy():
    """True iff pltpu.roll(x, s, axis) behaves like np.roll (data -> higher idx)."""
    def k(x_ref, o_ref):
        o_ref[...] = pltpu.roll(x_ref[...], shift=1, axis=0)

    x = jnp.arange(8, dtype=jnp.float32)[:, None] * jnp.ones((1, 128), jnp.float32)
    out = pl.pallas_call(k, out_shape=jax.ShapeDtypeStruct((8, 128), jnp.float32))(x)
    return bool(out[0, 0] == 7.0)


# ----------------------------------------------------------------------------
# In-kernel building block: fill the (M, 9*width) bf16 im2col scratch from the
# row-flattened (n, h, w) activations using sublane rolls + hoisted border
# masks (padding=1).  Followed by ONE deep-K matmul against w2 in the caller.
# ----------------------------------------------------------------------------
def _fill_im2col(im2col_ref, h1, *, H, W, shift_sign):
    """h1: (M, Cw) f32, M rows in (n, h, w) order.  im2col_ref: (M, 9*Cw) bf16."""
    M, Cw = h1.shape
    idx = jax.lax.broadcasted_iota(jnp.int32, (M, 1), 0)
    wo = idx % W
    ho = (idx // W) % H
    # Hoisted per-offset validity masks (static in H, W); cross-image taps are
    # zeroed because image borders coincide with these conditions.
    h_ok = {-1: ho >= 1, 0: None, 1: ho < H - 1}
    w_ok = {-1: wo >= 1, 0: None, 1: wo < W - 1}
    for t in range(9):
        dh, dw = t // 3 - 1, t % 3 - 1
        off = dh * W + dw                      # flat-row offset of this tap
        if off == 0:
            src = h1
        else:
            src = pltpu.roll(h1, shift=(shift_sign * off) % M, axis=0)
        m = h_ok[dh]
        if w_ok[dw] is not None:
            m = w_ok[dw] if m is None else (m & w_ok[dw])
        tap = src if m is None else jnp.where(m, src, 0.0)
        im2col_ref[:, t * Cw:(t + 1) * Cw] = tap.astype(jnp.bfloat16)


# ----------------------------------------------------------------------------
# Kernel 1: fused stride-2 Bottleneck with downsample branch.
# grid = (image groups,)  ["parallel"]
# ----------------------------------------------------------------------------
def _bottleneck_down_kernel(x_ref, w1_ref, b1_ref, w2_ref, b2_ref, w3_ref, b3_ref,
                            wd_ref, bd_ref, s_ref, o_ref, im2col_ref,
                            *, H, W, shift_sign):
    xb = x_ref[...].astype(jnp.bfloat16)                        # (Mi, Cin)

    # conv1 (1x1) + bn1 + relu
    h1 = jnp.maximum(
        jnp.dot(xb, w1_ref[...], preferred_element_type=jnp.float32) + b1_ref[...],
        0.0)                                                    # (Mi, width) f32

    # conv2 (3x3, pad 1) at full resolution: im2col scratch + ONE deep-K matmul
    _fill_im2col(im2col_ref, h1, H=H, W=W, shift_sign=shift_sign)
    h2 = jnp.maximum(
        jnp.dot(im2col_ref[...], w2_ref[...], preferred_element_type=jnp.float32)
        + b2_ref[...], 0.0)                                     # (Mi, width) f32

    # stride-2 row selection with an exact 0/1 bf16 matrix (bf16 x bf16 MXU).
    S = s_ref[...]                                              # (Mo, Mi) bf16
    h2s = jnp.dot(S, h2.astype(jnp.bfloat16),
                  preferred_element_type=jnp.float32).astype(jnp.bfloat16)
    xs = jnp.dot(S, xb, preferred_element_type=jnp.float32).astype(jnp.bfloat16)

    # conv3 (1x1) + bn3  and  downsample branch (1x1 stride-2 conv + bn)
    h3 = jnp.dot(h2s, w3_ref[...], preferred_element_type=jnp.float32) + b3_ref[...]
    ident = jnp.dot(xs, wd_ref[...], preferred_element_type=jnp.float32) + bd_ref[...]

    o_ref[...] = jnp.maximum(h3 + ident, 0.0).astype(o_ref.dtype)   # (Mo, out_c)


# ----------------------------------------------------------------------------
# Kernel 2: a run of identical stride-1 Bottlenecks.
# grid = (image groups, blocks)  ["parallel", "arbitrary"]; the residual stream
# lives in the VMEM-resident output block (constant index over the block axis).
# ----------------------------------------------------------------------------
def _bottleneck_stack_kernel(x_ref, w1_ref, b1_ref, w2_ref, b2_ref, w3_ref, b3_ref,
                             o_ref, im2col_ref, *, H, W, shift_sign):
    @pl.when(pl.program_id(1) == 0)
    def _():
        o_ref[...] = x_ref[...].astype(jnp.float32)

    resid = o_ref[...]                                          # (M, C) f32, resident
    xb = resid.astype(jnp.bfloat16)

    h1 = jnp.maximum(
        jnp.dot(xb, w1_ref[0], preferred_element_type=jnp.float32) + b1_ref[0],
        0.0)
    _fill_im2col(im2col_ref, h1, H=H, W=W, shift_sign=shift_sign)
    h2 = jnp.maximum(
        jnp.dot(im2col_ref[...], w2_ref[0], preferred_element_type=jnp.float32)
        + b2_ref[0], 0.0)
    h3 = jnp.dot(h2.astype(jnp.bfloat16), w3_ref[0],
                 preferred_element_type=jnp.float32) + b3_ref[0]

    o_ref[...] = jnp.maximum(h3 + resid, 0.0)


# ----------------------------------------------------------------------------
# Wrappers
# ----------------------------------------------------------------------------
def _make_subsample_matrix(ng, H, W, stride):
    """Exact 0/1 (bf16) matrix selecting rows (n, s*ho, s*wo) of a per-group
    (ng*H*W, .) flat layout."""
    Ho, Wo = H // stride, W // stride
    M_out, M_in = ng * Ho * Wo, ng * H * W
    r = jnp.arange(M_out)
    n = r // (Ho * Wo)
    rem = r % (Ho * Wo)
    ho = rem // Wo
    wo = rem % Wo
    r_in = n * H * W + (stride * ho) * W + stride * wo
    return jax.nn.one_hot(r_in, M_in, dtype=jnp.bfloat16)


def bottleneck_down(x2d, p, N, H, W, G, *, shift_sign):
    """Fused stride-2 Bottleneck: (N*H*W, Cin) -> (N*(H//2)*(W//2), out_c) bf16."""
    M_in, Cin = x2d.shape
    width = p["w1"].shape[1]
    out_c = p["w3"].shape[1]
    Ho, Wo = H // 2, W // 2
    ng = N // G
    Mi_blk, Mo_blk = ng * H * W, ng * Ho * Wo
    M_out = N * Ho * Wo
    S = _make_subsample_matrix(ng, H, W, 2)

    flops = 2 * (M_in * Cin * width + M_in * 9 * width * width
                 + M_out * Mi_blk * (width + Cin)
                 + M_out * width * out_c + M_out * Cin * out_c)
    bytes_accessed = int(
        x2d.size * x2d.dtype.itemsize + 2 * S.size + 2 * M_out * out_c
        + 2 * (p["w1"].size + p["w2"].size + p["w3"].size + p["wd"].size)
        + 4 * (p["b1"].size + p["b2"].size + p["b3"].size + p["bd"].size))

    kernel = functools.partial(_bottleneck_down_kernel, H=H, W=W, shift_sign=shift_sign)
    out = pl.pallas_call(
        kernel,
        out_shape=jax.ShapeDtypeStruct((M_out, out_c), jnp.bfloat16),
        grid=(G,),
        in_specs=[
            pl.BlockSpec((Mi_blk, Cin), lambda g: (g, 0)),          # activations
            pl.BlockSpec(p["w1"].shape, lambda g: (0, 0)),
            pl.BlockSpec(p["b1"].shape, lambda g: (0, 0)),
            pl.BlockSpec(p["w2"].shape, lambda g: (0, 0)),
            pl.BlockSpec(p["b2"].shape, lambda g: (0, 0)),
            pl.BlockSpec(p["w3"].shape, lambda g: (0, 0)),
            pl.BlockSpec(p["b3"].shape, lambda g: (0, 0)),
            pl.BlockSpec(p["wd"].shape, lambda g: (0, 0)),
            pl.BlockSpec(p["bd"].shape, lambda g: (0, 0)),
            pl.BlockSpec((Mo_blk, Mi_blk), lambda g: (0, 0)),       # S (bf16 0/1)
        ],
        out_specs=pl.BlockSpec((Mo_blk, out_c), lambda g: (g, 0)),
        scratch_shapes=[pltpu.VMEM((Mi_blk, 9 * width), jnp.bfloat16)],  # im2col
        cost_estimate=pl.CostEstimate(flops=int(flops), transcendentals=0,
                                      bytes_accessed=bytes_accessed),
        compiler_params=pltpu.CompilerParams(
            dimension_semantics=("parallel",),
            vmem_limit_bytes=_VMEM_LIMIT),
    )(x2d, p["w1"], p["b1"], p["w2"], p["b2"], p["w3"], p["b3"], p["wd"], p["bd"], S)
    return out, Ho, Wo


def bottleneck_stack(x2d, sp, N, H, W, G, *, shift_sign):
    """Run of B identical stride-1 Bottlenecks in one pallas_call, grid=(G, B)."""
    B, Cin, width = sp["w1"].shape
    C = sp["w3"].shape[2]                       # == Cin (expansion keeps channels)
    ng = N // G
    M_blk = ng * H * W
    M = N * H * W
    assert x2d.shape == (M, C)

    flops = 2 * B * M * (Cin * width + 9 * width * width + width * C)
    bytes_accessed = int(
        x2d.size * x2d.dtype.itemsize + 4 * M * C
        + 2 * (sp["w1"].size + sp["w2"].size + sp["w3"].size)
        + 4 * (sp["b1"].size + sp["b2"].size + sp["b3"].size))

    kernel = functools.partial(_bottleneck_stack_kernel, H=H, W=W, shift_sign=shift_sign)
    return pl.pallas_call(
        kernel,
        out_shape=jax.ShapeDtypeStruct((M, C), jnp.float32),
        grid=(G, B),
        in_specs=[
            pl.BlockSpec((M_blk, C), lambda g, i: (g, 0)),              # input (step-0 read)
            pl.BlockSpec((1, Cin, width), lambda g, i: (i, 0, 0)),      # w1 (bf16, folded)
            pl.BlockSpec((1, 1, width), lambda g, i: (i, 0, 0)),        # b1
            pl.BlockSpec((1, 9 * width, width), lambda g, i: (i, 0, 0)),  # w2
            pl.BlockSpec((1, 1, width), lambda g, i: (i, 0, 0)),        # b2
            pl.BlockSpec((1, width, C), lambda g, i: (i, 0, 0)),        # w3
            pl.BlockSpec((1, 1, C), lambda g, i: (i, 0, 0)),            # b3
        ],
        out_specs=pl.BlockSpec((M_blk, C), lambda g, i: (g, 0)),        # resident residual
        scratch_shapes=[pltpu.VMEM((M_blk, 9 * width), jnp.bfloat16)],  # im2col
        cost_estimate=pl.CostEstimate(flops=int(flops), transcendentals=0,
                                      bytes_accessed=bytes_accessed),
        compiler_params=pltpu.CompilerParams(
            dimension_semantics=("parallel", "arbitrary"),
            vmem_limit_bytes=_VMEM_LIMIT),
    )(x2d, sp["w1"], sp["b1"], sp["w2"], sp["b2"], sp["w3"], sp["b3"])


# ----------------------------------------------------------------------------
# Parameters (BN eval-mode folded; scale folded into bf16 conv weights).
# ----------------------------------------------------------------------------
def _conv_weight(key, fan_in, shape):
    return jax.random.normal(key, shape, jnp.float32) * jnp.sqrt(2.0 / fan_in)


def _fold_bn(key, c, eps=1e-5):
    k1, k2, k3, k4 = jax.random.split(key, 4)
    gamma = 1.0 + 0.1 * jax.random.normal(k1, (c,), jnp.float32)
    beta = 0.1 * jax.random.normal(k2, (c,), jnp.float32)
    rmean = 0.1 * jax.random.normal(k3, (c,), jnp.float32)
    rvar = 1.0 + 0.1 * jnp.abs(jax.random.normal(k4, (c,), jnp.float32))
    scale = gamma / jnp.sqrt(rvar + eps)
    bias = beta - rmean * scale
    return scale, bias


def make_bottleneck_params(key, inplanes, planes, stride):
    width = planes               # base_width=64, groups=1 -> width = planes
    out_c = planes * 4           # expansion = 4
    keys = jax.random.split(key, 8)
    w1 = _conv_weight(keys[0], inplanes, (inplanes, width))
    s1, b1 = _fold_bn(keys[1], width)
    w2 = _conv_weight(keys[2], 9 * width, (3, 3, width, width)).reshape(9 * width, width)
    s2, b2 = _fold_bn(keys[3], width)
    w3 = _conv_weight(keys[4], width, (width, out_c))
    s3, b3 = _fold_bn(keys[5], out_c)
    p = {
        "w1": (w1 * s1[None, :]).astype(jnp.bfloat16),
        "b1": b1.reshape(1, width),
        "w2": (w2 * s2[None, :]).astype(jnp.bfloat16),
        "b2": b2.reshape(1, width),
        "w3": (w3 * s3[None, :]).astype(jnp.bfloat16),
        "b3": b3.reshape(1, out_c),
    }
    if stride != 1 or inplanes != out_c:
        wd = _conv_weight(keys[6], inplanes, (inplanes, out_c))
        sd, bd = _fold_bn(keys[7], out_c)
        p["wd"] = (wd * sd[None, :]).astype(jnp.bfloat16)
        p["bd"] = bd.reshape(1, out_c)
    return p


def _stack_block_params(plist):
    keys = ("w1", "b1", "w2", "b2", "w3", "b3")
    return {k: jnp.stack([p[k] for p in plist]) for k in keys}


def make_highresnet34_params(key):
    cfg = ([(128, 64, 2)] + [(256, 64, 1)] * 5
           + [(256, 128, 2)] + [(512, 128, 1)] * 2)
    keys = jax.random.split(key, len(cfg))
    blocks = [make_bottleneck_params(k, *c) for k, c in zip(keys, cfg)]
    return {
        "layer3a": blocks[0],
        "layer3bf": _stack_block_params(blocks[1:6]),
        "layer4a": blocks[6],
        "layer4bc": _stack_block_params(blocks[7:9]),
    }


# ----------------------------------------------------------------------------
# Forward pass (PyTorch NCHW in/out; kernels work on flattened NHWC rows).
# ----------------------------------------------------------------------------
def highresnet34_forward(x_nchw, params, *, roll_matches_numpy=True):
    shift_sign = -1 if roll_matches_numpy else 1
    N, C, H, W = x_nchw.shape
    G = 2 if N % 2 == 0 else 1                  # image groups (parallel grid axis)
    x2d = jnp.transpose(x_nchw, (0, 2, 3, 1)).reshape(N * H * W, C)

    x2d, H, W = bottleneck_down(x2d, params["layer3a"], N, H, W, G, shift_sign=shift_sign)
    x2d = bottleneck_stack(x2d, params["layer3bf"], N, H, W, G, shift_sign=shift_sign)
    x2d, H, W = bottleneck_down(x2d, params["layer4a"], N, H, W, G, shift_sign=shift_sign)
    x2d = bottleneck_stack(x2d, params["layer4bc"], N, H, W, G, shift_sign=shift_sign)

    out_c = x2d.shape[1]
    return jnp.transpose(x2d.reshape(N, H, W, out_c), (0, 3, 1, 2))


# ----------------------------------------------------------------------------
if __name__ == "__main__":
    key = jax.random.PRNGKey(0)
    kx, kp = jax.random.split(key)

    # layer3a expects 128 input channels; 16x16 spatial -> 4x4 output.
    x = jax.random.normal(kx, (2, 128, 16, 16), jnp.float32)   # NCHW
    params = make_highresnet34_params(kp)

    roll_np = _roll_matches_numpy()
    fwd = jax.jit(functools.partial(highresnet34_forward, roll_matches_numpy=roll_np))

    out = jax.block_until_ready(fwd(x, params))

    assert out.shape == (2, 512, 4, 4), out.shape
    assert bool(jnp.all(jnp.isfinite(out)))
    print("KERNEL_OK")
</pallas_src>

<mosaic_0001>
module attributes {stable_mosaic.version = 11 : i64} {
  func.func @k(%arg0: memref<8x128xf32, #tpu.memory_space<vmem>>, %arg1: memref<8x128xf32, #tpu.memory_space<vmem>>) attributes {dimension_semantics = [], scalar_prefetch = 0 : i64, scratch_operands = 0 : i64, tpu.core_type = #tpu.core_type<tc>} {
    %c0 = arith.constant 0 : index
    %c0_0 = arith.constant 0 : index
    %0 = vector.load %arg0[%c0, %c0_0] : memref<8x128xf32, #tpu.memory_space<vmem>>, vector<8x128xf32>
    %c1_i32 = arith.constant 1 : i32
    %1 = tpu.dynamic_rotate %0 by %c1_i32 dim 0 : vector<8x128xf32>, i32 -> vector<8x128xf32>
    %c0_1 = arith.constant 0 : index
    %c0_2 = arith.constant 0 : index
    %2 = vector.load %arg1[%c0_1, %c0_2] : memref<8x128xf32, #tpu.memory_space<vmem>>, vector<8x128xf32>
    tpu.vector_store %arg1[%c0_1, %c0_2], %1 {strides = array<i32>} : memref<8x128xf32, #tpu.memory_space<vmem>>, vector<8x128xf32>,
    return
  }
}

</mosaic_0001>

<bundles_post_ra>
// kernel: tpu_custom_call.1
= control target key start
LH: loop header
LB: loop body
LE: loop exit
PB: predicated region body
PF: predicated region fallthrough
CT: control target
= control target key end

     0   :  { %6 = vsyncpa [#allocation3], 0  ;;  %s125_s0 = inlined_call_operand.hbm [shape: f32[8,128], index: 0, kind: input, shape index: {}]   ;;  %s126_s1 = inlined_call_operand.hbm [shape: f32[8,128], index: 1, kind: output, shape index: {}]  }
   0x1   :  { %7 = vsyncpa [#allocation4], 0  ;;  %s89_s6 = smov [#allocation2]   ;;  %s41_s10 = scalar_lea.hbm %s125_s0, 128 }
   0x2   :  { %s14_s7 = sshll.u32 %s89_s6, 4  ;;  %p42_p0 = scmp.ne.s32.totalorder %s125_s0, %s41_s10  ;;  %s15_s7 = int_to_ptr.vmem [resolvable:$true] %s14_s7 }
   0x3   :  { %p45_p1 = scmp.lt.u32.totalorder %s41_s10, %s125_s0 }
   0x5   :  { %p47_p2 = pnand %p45_p1, %p42_p0 }
   0x7   :  { %50 = shalt.err (!%p47_p2)
}
   0x8   :  { %s51_s15 = scalar_lea.vmem %s15_s7, 128  ;;  %p56_p4 = scmp.lt.s32.totalorder %s15_s7, %s15_s7 }
   0x9   :  { %p52_p3 = scmp.ne.s32.totalorder %s15_s7, %s51_s15  ;;  %p57_p5 = scmp.lt.s32.totalorder %s51_s15, %s51_s15 }
   0xb   :  { %p58_p6 = por %p57_p5, %p56_p4 }
   0xd   :  { %p59_p7 = pnand %p58_p6, %p52_p3 }
   0xf   :  { %62 = shalt.err (!%p59_p7)
}
  0x10   :  { %17 = dma.hbm_to_vmem [thread:$0]  %s125_s0, 128, %s15_s7, [#allocation3]  }
  0x11   :  { %85 = dma.done.wait [#allocation3], 128  }
  0x12   :  { %86 = vsyncadd [#allocation3], 4294967168  ;;  %s90_s18 = smov [#allocation5]   ;;  %v21_v0 = vld [vmem:[#allocation2] sm:$0xff] }
  0x13   :  { %s30_s19 = sshll.u32 %s90_s18, 4  ;;  %v22_v1 = vrot.slane %v21_v0, 7  ;;  %s31_s19 = int_to_ptr.vmem [resolvable:$true] %s30_s19 }
  0x14   :  { %s63_s20 = scalar_lea.vmem %s31_s19, 128  ;;  %p68_p9 = scmp.lt.s32.totalorder %s31_s19, %s31_s19 }
  0x15   :  { %23 = vst [vmem:[#allocation5] sm:$0xff] %v22_v1  ;;  %p64_p8 = scmp.ne.s32.totalorder %s31_s19, %s63_s20  ;;  %p69_p10 = scmp.lt.s32.totalorder %s63_s20, %s63_s20 }
  0x17   :  { %p70_p11 = por %p69_p10, %p68_p9 }
  0x19   :  { %p71_p12 = pnand %p70_p11, %p64_p8 }
  0x1b   :  { %74 = shalt.err (!%p71_p12)
}
  0x1c   :  { %s75_s23 = scalar_lea.hbm %s126_s1, 128 }
  0x1d   :  { %p76_p13 = scmp.ne.s32.totalorder %s126_s1, %s75_s23  ;;  %p79_p0 = scmp.lt.u32.totalorder %s75_s23, %s126_s1 }
  0x1f   :  { %p81_p1 = pnand %p79_p0, %p76_p13 }
  0x21   :  { %84 = shalt.err (!%p81_p1)
}
  0x22   :  { %33 = dma.vmem_to_hbm [thread:$0]  %s31_s19, 128, %s126_s1, [#allocation4]  }
  0x23   :  { %87 = dma.done.wait [#allocation4], 128  }
  0x24   :  { %88 = vsyncadd [#allocation4], 4294967168 }
  0x25   :  { %37 = vsyncpa [#allocation3], 1 }
  0x26   :  { %38 = vsyncpa [#allocation4], 1 }

</bundles_post_ra>
